<compile_context>
chip_gen: v7x
topology: tpu7x:2x2x1
jax: 0.10.0
libtpu: 0.0.40
codegen_flags: <defaults>
</compile_context>

<pallas_src>
import jax
import jax.numpy as jnp
from jax.experimental import pallas as pl
from jax.experimental.pallas import tpu as pltpu


def _se_conv_kernel(gate_ref, x_ref, w_ref, o_ref):
    # gate_ref: (1, Cin), x_ref: (Cin, HW), w_ref: (Cout, Cin), o_ref: (Cout, HW)
    # Sigmoid on EUP in f32 (mandatory f32 path on v5e).
    g = jax.nn.sigmoid(gate_ref[...].astype(jnp.float32))             # (1, Cin)
    # Fold the channel gate into the weight: sublane broadcast over Cout rows.
    wg = (w_ref[...].astype(jnp.float32) * g).astype(w_ref.dtype)     # (Cout, Cin)
    # 1x1 conv == matmul over channels; MXU with f32 accumulation.
    x = x_ref[...].astype(w_ref.dtype)                                 # (Cin, HW)
    o_ref[...] = jnp.dot(wg, x,
                         preferred_element_type=jnp.float32).astype(o_ref.dtype)


def sigmoid_mul_conv1x1(x171, x167, weight, *, weight_dtype=None):
    """sigmoid(x171) * x167 followed by a 1x1 conv (no bias).

    x171:   (1, Cin, 1, 1) gate logits
    x167:   (1, Cin, H, W) activations
    weight: (Cout, Cin, 1, 1) conv weight
    weight_dtype: optional dtype (e.g. jnp.bfloat16) to feed the weight in,
                  halving the dominant weight DMA; f32 accumulation is kept.
    """
    N, Cin, H, W = x167.shape
    Cout = weight.shape[0]
    assert N == 1, "kernel written for batch=1 (matches the reference module)"
    HW = H * W

    # Free row-major views — no HBM transposes.
    x_flat = x167.reshape(Cin, HW)
    gate = x171.reshape(1, Cin)                 # lane-dense row, ~2.7 KB DMA
    w = weight.reshape(Cout, Cin)
    if weight_dtype is not None:
        w = w.astype(weight_dtype)

    flops = 2 * HW * Cin * Cout + Cout * Cin    # matmul + weight gating
    bytes_accessed = (
        x_flat.size * x_flat.dtype.itemsize
        + gate.size * gate.dtype.itemsize
        + w.size * w.dtype.itemsize
        + Cout * HW * jnp.dtype(x167.dtype).itemsize
    )

    # Whole problem (< 1.5 MB padded) fits VMEM on v5e/v6e/v7x:
    # single invocation, full-array VMEM blocks, no grid / pipeline machinery.
    out_flat = pl.pallas_call(
        _se_conv_kernel,
        out_shape=jax.ShapeDtypeStruct((Cout, HW), x167.dtype),
        in_specs=[
            pl.BlockSpec(memory_space=pltpu.MemorySpace.VMEM),   # gate (1, Cin)
            pl.BlockSpec(memory_space=pltpu.MemorySpace.VMEM),   # x    (Cin, HW)
            pl.BlockSpec(memory_space=pltpu.MemorySpace.VMEM),   # w    (Cout, Cin)
        ],
        out_specs=pl.BlockSpec(memory_space=pltpu.MemorySpace.VMEM),
        cost_estimate=pl.CostEstimate(
            flops=flops, transcendentals=Cin, bytes_accessed=bytes_accessed),
    )(gate, x_flat, w)

    # (Cout, HW) -> (1, Cout, H, W): free reshape.
    return out_flat.reshape(1, Cout, H, W)


if __name__ == "__main__":
    key = jax.random.PRNGKey(0)
    k1, k2, k3 = jax.random.split(key, 3)

    # Shapes from the reference module.
    N, Cin, Cout, H, W = 1, 672, 192, 7, 7
    x167 = jax.random.normal(k1, (N, Cin, H, W), dtype=jnp.float32)
    x171 = jax.random.normal(k2, (N, Cin, 1, 1), dtype=jnp.float32)
    weight = jax.random.normal(k3, (Cout, Cin, 1, 1), dtype=jnp.float32) * (1.0 / jnp.sqrt(Cin))

    # Default (exact f32) path.
    out = jax.block_until_ready(sigmoid_mul_conv1x1(x171, x167, weight))

    # Pure-JAX reference for correctness.
    gated = x167 * jax.nn.sigmoid(x171)
    ref = jnp.einsum("nchw,oc->nohw", gated, weight.reshape(Cout, Cin))
    assert out.shape == (N, Cout, H, W)
    assert jnp.allclose(out, ref, atol=1e-4, rtol=1e-4), "mismatch vs reference (f32 path)"

    # Optional bf16-weight-DMA path (halves dominant HBM traffic); looser tolerance.
    out_bf16 = jax.block_until_ready(
        sigmoid_mul_conv1x1(x171, x167, weight, weight_dtype=jnp.bfloat16))
    assert jnp.allclose(out_bf16, ref, atol=5e-2, rtol=5e-2), "mismatch vs reference (bf16 path)"

    print("KERNEL_OK")
</pallas_src>

<mosaic_0001>
module attributes {stable_mosaic.version = 11 : i64} {
  func.func @_se_conv_kernel(%arg0: memref<1x672xf32, #tpu.memory_space<vmem>>, %arg1: memref<672x49xf32, #tpu.memory_space<vmem>>, %arg2: memref<192x672xf32, #tpu.memory_space<vmem>>, %arg3: memref<192x49xf32, #tpu.memory_space<vmem>>) attributes {dimension_semantics = [], scalar_prefetch = 0 : i64, scratch_operands = 0 : i64, tpu.core_type = #tpu.core_type<tc>} {
    %c0 = arith.constant 0 : index
    %c0_0 = arith.constant 0 : index
    %0 = vector.load %arg0[%c0, %c0_0] : memref<1x672xf32, #tpu.memory_space<vmem>>, vector<1x672xf32>
    %1 = arith.negf %0 : vector<1x672xf32>
    %2 = math.exp %1 : vector<1x672xf32>
    %cst = arith.constant 1.000000e+00 : f32
    %3 = vector.broadcast %cst : f32 to vector<1x672xf32>
    %4 = arith.addf %3, %2 : vector<1x672xf32>
    %5 = arith.divf %3, %4 : vector<1x672xf32>
    %c0_1 = arith.constant 0 : index
    %c0_2 = arith.constant 0 : index
    %6 = vector.load %arg2[%c0_1, %c0_2] : memref<192x672xf32, #tpu.memory_space<vmem>>, vector<192x672xf32>
    %7 = vector.broadcast %5 : vector<1x672xf32> to vector<192x672xf32>
    %8 = arith.mulf %6, %7 : vector<192x672xf32>
    %c0_3 = arith.constant 0 : index
    %c0_4 = arith.constant 0 : index
    %9 = vector.load %arg1[%c0_3, %c0_4] : memref<672x49xf32, #tpu.memory_space<vmem>>, vector<672x49xf32>
    %cst_5 = arith.constant dense<0.000000e+00> : vector<192x49xf32>
    %10 = tpu.matmul %8, %9, %cst_5 {dimension_numbers = #tpu.dot_dimension_numbers<[1], [0], [0], [1], [0, 0, 1, 1], [], []>} : vector<192x672xf32>, vector<672x49xf32>, vector<192x49xf32> -> vector<192x49xf32>
    %c0_6 = arith.constant 0 : index
    %c0_7 = arith.constant 0 : index
    %11 = vector.load %arg3[%c0_6, %c0_7] : memref<192x49xf32, #tpu.memory_space<vmem>>, vector<192x49xf32>
    tpu.vector_store %arg3[%c0_6, %c0_7], %10 {strides = array<i32>} : memref<192x49xf32, #tpu.memory_space<vmem>>, vector<192x49xf32>,
    return
  }
}

</mosaic_0001>

<bundles_post_ra>
// kernel: tpu_custom_call.1
= control target key start
LH: loop header
LB: loop body
LE: loop exit
PB: predicated region body
PF: predicated region fallthrough
CT: control target
= control target key end

     0   :  { %8 = vsyncpa [#allocation3], 0  ;;  %s1383_s12 = smov [#allocation2]   ;;  %s2088_s0 = inlined_call_operand.vmem [shape: f32[1,672], index: 0, kind: input, shape index: {}]   ;;  %s2089_s1 = inlined_call_operand.vmem [shape: f32[672,49], index: 1, kind: input, shape index: {}]   ;;  %s2090_s2 = inlined_call_operand.hbm [shape: f32[192,672], index: 2, kind: input, shape index: {}]   ;;  %s2091_s3 = inlined_call_operand.vmem [shape: f32[192,49], index: 3, kind: output, shape index: {}]  }
   0x1   :  { %s18_s13 = sshll.u32 %s1383_s12, 4  ;;  %s1359_s16 = scalar_lea.hbm %s2090_s2, 18432  ;;  %s19_s13 = int_to_ptr.vmem [resolvable:$true] %s18_s13 }
   0x2   :  { %p1360_p0 = scmp.ne.s32.totalorder %s2090_s2, %s1359_s16  ;;  %p1363_p1 = scmp.lt.u32.totalorder %s1359_s16, %s2090_s2 }
   0x4   :  { %p1365_p2 = pnand %p1363_p1, %p1360_p0 }
   0x6   :  { %1368 = shalt.err (!%p1365_p2)
}
   0x7   :  { %s1369_s21 = scalar_lea.vmem %s19_s13, 18432  ;;  %p1374_p4 = scmp.lt.s32.totalorder %s19_s13, %s19_s13 }
   0x8   :  { %p1370_p3 = scmp.ne.s32.totalorder %s19_s13, %s1369_s21  ;;  %p1375_p5 = scmp.lt.s32.totalorder %s1369_s21, %s1369_s21 }
   0xa   :  { %p1376_p6 = por %p1375_p5, %p1374_p4 }
   0xc   :  { %p1377_p7 = pnand %p1376_p6, %p1370_p3 }
   0xe   :  { %1380 = shalt.err (!%p1377_p7)
}
   0xf   :  { %s1384_s22 = smov 768   ;;  %s1385_s23 = smov 48  }
  0x10   :  { %24 = dma.hbm_to_vmem [thread:$0]  %s2090_s2, 18432, %s19_s13, [#allocation3], %s1384_s22, %s1384_s22, %s1385_s23  }
  0x11   :  { %1381 = dma.done.wait [#allocation3], 18432  }
  0x12   :  { %1382 = vsyncadd [#allocation3], 4294948864  ;;  %v1386_v0 = vmov 0.0|0.0   ;;  %v354_v1 = vld [vmem:[%s2089_s1] sm:$0xff]  ;;  %v355_v2 = vld [vmem:[%s2089_s1 + $0x8] sm:$0xff]  ;;  %vm438_vm0 = vcmask 261120  }
  0x13   :  { %1121 = vmatprep.subr.bf16.mxu1 %v1386_v0  ;;  %1169 = vmatprep.subr.bf16.mxu0 %v1386_v0  ;;  %v386_v3 = vld [vmem:[%s2089_s1 + $0x100] sm:$0xff]  ;;  %v1122_v4 = vpack.c.bf16 %v355_v2, %v354_v1  ;;  %v387_v5 = vld [vmem:[%s2089_s1 + $0x108] sm:$0xff]  ;;  %v356_v6 = vld [vmem:[%s2089_s1 + $0x10] sm:$0xff]  ;;  %vm1066_vm1 = vcmask 400384  }
  0x14   :  { %v357_v7 = vld [vmem:[%s2089_s1 + $0x18] sm:$0xff]  ;;  %v1439_v8 = vpack.c.bf16 %v387_v5, %v386_v3  ;;  %v388_v9 = vld [vmem:[%s2089_s1 + $0x110] sm:$0xff]  ;;  %v358_v13 = vld [vmem:[%s2089_s1 + $0x20] sm:$0xff] }
  0x15   :  { %v389_v10 = vld [vmem:[%s2089_s1 + $0x118] sm:$0xff]  ;;  %1123 = vmatpush1.bf16.msra.mxu1 %v1122_v4  ;;  %v1125_v11 = vpack.c.bf16 %v357_v7, %v356_v6  ;;  %v359_v14 = vld [vmem:[%s2089_s1 + $0x28] sm:$0xff]  ;;  %v390_v15 = vld [vmem:[%s2089_s1 + $0x120] sm:$0xff]  ;;  %v180_v4 = vlaneseq }
  0x16   :  { %1171 = vmatpush1.bf16.msra.mxu0 %v1439_v8  ;;  %1124 = vmatprep.subr.bf16.mxu1 %v1386_v0  ;;  %v1449_v12 = vpack.c.bf16 %v389_v10, %v388_v9  ;;  %v391_v16 = vld [vmem:[%s2089_s1 + $0x128] sm:$0xff]  ;;  %v1128_v17 = vpack.c.bf16 %v359_v14, %v358_v13  ;;  %v360_v19 = vld [vmem:[%s2089_s1 + $0x30] sm:$0xff]  ;;  %v361_v20 = vld [vmem:[%s2089_s1 + $0x38] sm:$0xff] }
  0x17   :  { %1172 = vmatprep.subr.bf16.mxu0 %v1386_v0  ;;  %v1466_v18 = vpack.c.bf16 %v391_v16, %v390_v15  ;;  %v392_v21 = vld [vmem:[%s2089_s1 + $0x130] sm:$0xff]  ;;  %v393_v22 = vld [vmem:[%s2089_s1 + $0x138] sm:$0xff]  ;;  %v1131_v23 = vpack.c.bf16 %v361_v20, %v360_v19  ;;  %v362_v25 = vld [vmem:[%s2089_s1 + $0x40] sm:$0xff]  ;;  %v1613_v13 = vshrl.u32 %v180_v4, 7 }
  0x18   :  { %v1483_v24 = vpack.c.bf16 %v393_v22, %v392_v21  ;;  %v363_v26 = vld [vmem:[%s2089_s1 + $0x48] sm:$0xff]  ;;  %v394_v27 = vld [vmem:[%s2089_s1 + $0x140] sm:$0xff]  ;;  %v364_v31 = vld [vmem:[%s2089_s1 + $0x50] sm:$0xff] }
  0x19   :  { %1126 = vmatpush1.bf16.msra.mxu1 %v1125_v11  ;;  %v395_v28 = vld [vmem:[%s2089_s1 + $0x148] sm:$0xff]  ;;  %v1134_v29 = vpack.c.bf16 %v363_v26, %v362_v25  ;;  %v365_v32 = vld [vmem:[%s2089_s1 + $0x58] sm:$0xff]  ;;  %v396_v33 = vld [vmem:[%s2089_s1 + $0x150] sm:$0xff]  ;;  %v186_v21 = vsub.s32 1, %v1613_v13  ;;  %v194_v22 = vsub.s32 3, %v1613_v13 }
  0x1a   :  { %1174 = vmatpush1.bf16.msra.mxu0 %v1449_v12  ;;  %1127 = vmatprep.subr.bf16.mxu1 %v1386_v0  ;;  %v1500_v30 = vpack.c.bf16 %v395_v28, %v394_v27  ;;  %v397_v34 = vld [vmem:[%s2089_s1 + $0x158] sm:$0xff]  ;;  %v1137_v35 = vpack.c.bf16 %v365_v32, %v364_v31  ;;  %v366_v37 = vld [vmem:[%s2089_s1 + $0x60] sm:$0xff]  ;;  %v367_v38 = vld [vmem:[%s2089_s1 + $0x68] sm:$0xff] }
  0x1b   :  { %1175 = vmatprep.subr.bf16.mxu0 %v1386_v0  ;;  %v1517_v36 = vpack.c.bf16 %v397_v34, %v396_v33  ;;  %v398_v39 = vld [vmem:[%s2089_s1 + $0x160] sm:$0xff]  ;;  %v399_v40 = vld [vmem:[%s2089_s1 + $0x168] sm:$0xff]  ;;  %v1140_v43 = vpack.c.bf16 %v367_v38, %v366_v37  ;;  %v368_v45 = vld [vmem:[%s2089_s1 + $0x70] sm:$0xff] }
  0x1c   :  { %v28_v41 = vld [vmem:[%s2088_s0] sm:$0x3f]  ;;  %v1537_v44 = vpack.c.bf16 %v399_v40, %v398_v39  ;;  %v369_v46 = vld [vmem:[%s2089_s1 + $0x78] sm:$0xff]  ;;  %v400_v47 = vld [vmem:[%s2089_s1 + $0x170] sm:$0xff] }
  0x1d   :  { %1129 = vmatpush1.bf16.msra.mxu1 %v1128_v17  ;;  %v1096_v42 = vmul.f32 -1.442695, %v28_v41  ;;  %v401_v48 = vld [vmem:[%s2089_s1 + $0x178] sm:$0xff]  ;;  %v1143_v49 = vpack.c.bf16 %v369_v46, %v368_v45  ;;  %v370_v51 = vld [vmem:[%s2089_s1 + $0x80] sm:$0xff]  ;;  %v371_v52 = vld [vmem:[%s2089_s1 + $0x88] sm:$0xff] }
  0x1e   :  { %1177 = vmatpush1.bf16.msra.mxu0 %v1466_v18  ;;  %1130 = vmatprep.subr.bf16.mxu1 %v1386_v0  ;;  %v1554_v50 = vpack.c.bf16 %v401_v48, %v400_v47  ;;  %v402_v53 = vld [vmem:[%s2089_s1 + $0x180] sm:$0xff]  ;;  %v403_v54 = vld [vmem:[%s2089_s1 + $0x188] sm:$0xff]  ;;  %v1146_v55 = vpack.c.bf16 %v371_v52, %v370_v51  ;;  %v372_v57 = vld [vmem:[%s2089_s1 + $0x90] sm:$0xff]  ;;  %v182_v48 = vsub.s32 0, %v1613_v13  ;;  %v190_v51 = vsub.s32 2, %v1613_v13 }
  0x1f   :  { %1178 = vmatprep.subr.bf16.mxu0 %v1386_v0  ;;  %1355 = vpow2.f32 %v1096_v42  ;;  %v1571_v56 = vpack.c.bf16 %v403_v54, %v402_v53  ;;  %v373_v58 = vld [vmem:[%s2089_s1 + $0x98] sm:$0xff]  ;;  %v404_v59 = vld [vmem:[%s2089_s1 + $0x190] sm:$0xff]  ;;  %v374_v2 = vld [vmem:[%s2089_s1 + $0xa0] sm:$0xff] }
  0x20   :  { %v405_v60 = vld [vmem:[%s2089_s1 + $0x198] sm:$0xff]  ;;  %v1149_v62 = vpack.c.bf16 %v373_v58, %v372_v57  ;;  %v375_v3 = vld [vmem:[%s2089_s1 + $0xa8] sm:$0xff]  ;;  %v406_v5 = vld [vmem:[%s2089_s1 + $0x1a0] sm:$0xff] }
  0x21   :  { %1132 = vmatpush1.bf16.msra.mxu1 %v1131_v23  ;;  %v1588_v1 = vpack.c.bf16 %v405_v60, %v404_v59  ;;  %v407_v6 = vld [vmem:[%s2089_s1 + $0x1a8] sm:$0xff]  ;;  %v1152_v7 = vpack.c.bf16 %v375_v3, %v374_v2  ;;  %v376_v10 = vld [vmem:[%s2089_s1 + $0xb0] sm:$0xff]  ;;  %v377_v11 = vld [vmem:[%s2089_s1 + $0xb8] sm:$0xff] }
  0x22   :  { %1180 = vmatpush1.bf16.msra.mxu0 %v1483_v24  ;;  %1133 = vmatprep.subr.bf16.mxu1 %v1386_v0  ;;  %v1605_v9 = vpack.c.bf16 %v407_v6, %v406_v5  ;;  %v408_v14 = vld [vmem:[%s2089_s1 + $0x1b0] sm:$0xff]  ;;  %v409_v15 = vld [vmem:[%s2089_s1 + $0x1b8] sm:$0xff]  ;;  %v1155_v16 = vpack.c.bf16 %v377_v11, %v376_v10  ;;  %v378_v19 = vld [vmem:[%s2089_s1 + $0xc0] sm:$0xff] }
  0x23   :  { %1181 = vmatprep.subr.bf16.mxu0 %v1386_v0  ;;  %v1624_v17 = vpack.c.bf16 %v409_v15, %v408_v14  ;;  %v379_v20 = vld [vmem:[%s2089_s1 + $0xc8] sm:$0xff]  ;;  %v410_v23 = vld [vmem:[%s2089_s1 + $0x1c0] sm:$0xff]  ;;  %v380_v32 = vld [vmem:[%s2089_s1 + $0xd0] sm:$0xff] }
  0x24   :  { %v411_v25 = vld [vmem:[%s2089_s1 + $0x1c8] sm:$0xff]  ;;  %v1158_v27 = vpack.c.bf16 %v379_v20, %v378_v19  ;;  %v381_v33 = vld [vmem:[%s2089_s1 + $0xd8] sm:$0xff]  ;;  %v412_v37 = vld [vmem:[%s2089_s1 + $0x1d0] sm:$0xff] }
  0x25   :  { %1135 = vmatpush1.bf16.msra.mxu1 %v1134_v29  ;;  %v36_v28 = vld [vmem:[#allocation2 + $0x8] sm:$0xff]  ;;  %v38_v29 = vld [vmem:[#allocation2 + $0x18] sm:$0xff]  ;;  %v1645_v31 = vpack.c.bf16 %v411_v25, %v410_v23  ;;  %v1161_v41 = vpack.c.bf16 %v381_v33, %v380_v32  ;;  %v414_v46 = vld [vmem:[%s2089_s1 + $0x1e0] sm:$0xff] }
  0x26   :  { %1183 = vmatpush1.bf16.msra.mxu0 %v1500_v30  ;;  %1136 = vmatprep.subr.bf16.mxu1 %v1386_v0  ;;  %v413_v38 = vld [vmem:[%s2089_s1 + $0x1d8] sm:$0xff]  ;;  %v383_v45 = vld [vmem:[%s2089_s1 + $0xe8] sm:$0xff]  ;;  %v384_v53 = vld [vmem:[%s2089_s1 + $0xf0] sm:$0xff] }
  0x27   :  { %1184 = vmatprep.subr.bf16.mxu0 %v1386_v0  ;;  %v1670_v42 = vpack.c.bf16 %v413_v38, %v412_v37  ;;  %v415_v47 = vld [vmem:[%s2089_s1 + $0x1e8] sm:$0xff]  ;;  %v385_v54 = vld [vmem:[%s2089_s1 + $0xf8] sm:$0xff]  ;;  %v35_v60 = vld [vmem:[#allocation2] sm:$0xff] }
  0x28   :  { %v1689_v52 = vpack.c.bf16 %v415_v47, %v414_v46  ;;  %v417_v57 = vld [vmem:[%s2089_s1 + $0x1f8] sm:$0xff]  ;;  %v1167_v59 = vpack.c.bf16 %v385_v54, %v384_v53  ;;  %v418_v2 = vld [vmem:[%s2089_s1 + $0x200] sm:$0xff]  ;;  %v419_v3 = vld [vmem:[%s2089_s1 + $0x208] sm:$0xff] }
  0x29   :  { %1138 = vmatpush1.bf16.msra.mxu1 %v1137_v35  ;;  %v1356_v61 = vpop.eup %1355  ;;  %v42_v4 = vld [vmem:[#allocation2 + $0x38] sm:$0xff]  ;;  %v44_v6 = vld [vmem:[#allocation2 + $0x48] sm:$0xff]  ;;  %v41_v10 = vld [vmem:[#allocation2 + $0x30] sm:$0xff]  ;;  %v1218_v11 = vpack.c.bf16 %v419_v3, %v418_v2 }
  0x2a   :  { %1186 = vmatpush1.bf16.msra.mxu0 %v1517_v36  ;;  %1139 = vmatprep.subr.bf16.mxu1 %v1386_v0  ;;  %v32_v63 = vadd.f32 1.0, %v1356_v61  ;;  %v43_v15 = vld [vmem:[#allocation2 + $0x40] sm:$0xff]  ;;  %v420_v20 = vld [vmem:[%s2089_s1 + $0x210] sm:$0xff]  ;;  %v50_v23 = vld [vmem:[#allocation2 + $0x78] sm:$0xff] }
  0x2b   :  { %1187 = vmatprep.subr.bf16.mxu0 %v1386_v0  ;;  %v49_v32 = vld [vmem:[#allocation2 + $0x70] sm:$0xff]  ;;  %v54_v33 = vld [vmem:[#allocation2 + $0x98] sm:$0xff]  ;;  %v56_v38 = vld [vmem:[#allocation2 + $0xa8] sm:$0xff] }
  0x2c   :  { %1357 = vrcp.f32 %v32_v63  ;;  %v37_v63 = vld [vmem:[#allocation2 + $0x10] sm:$0xff]  ;;  %v425_v54 = vld [vmem:[%s2089_s1 + $0x238] sm:$0xff] }
  0x2d   :  { %1141 = vmatpush1.bf16.msra.mxu1 %v1140_v43  ;;  %v382_v43 = vld [vmem:[%s2089_s1 + $0xe0] sm:$0xff]  ;;  %v424_v53 = vld [vmem:[%s2089_s1 + $0x230] sm:$0xff]  ;;  %v66_v3 = vld [vmem:[#allocation2 + $0xf8] sm:$0xff] }
  0x2e   :  { %1189 = vmatpush1.bf16.msra.mxu0 %v1537_v44  ;;  %1142 = vmatprep.subr.bf16.mxu1 %v1386_v0  ;;  %v1227_v2 = vpack.c.bf16 %v425_v54, %v424_v53 }
  0x2f   :  { %1190 = vmatprep.subr.bf16.mxu0 %v1386_v0 }
  0x31   :  { %1144 = vmatpush1.bf16.msra.mxu1 %v1143_v49  ;;  %v1164_v49 = vpack.c.bf16 %v383_v45, %v382_v43  ;;  %v53_v45 = vld [vmem:[#allocation2 + $0x90] sm:$0xff] }
  0x32   :  { %1192 = vmatpush1.bf16.msra.mxu0 %v1554_v50  ;;  %1145 = vmatprep.subr.bf16.mxu1 %v1386_v0 }
  0x33   :  { %1193 = vmatprep.subr.bf16.mxu0 %v1386_v0 }
  0x35   :  { %1147 = vmatpush1.bf16.msra.mxu1 %v1146_v55  ;;  %v416_v55 = vld [vmem:[%s2089_s1 + $0x1f0] sm:$0xff] }
  0x36   :  { %1195 = vmatpush1.bf16.msra.mxu0 %v1571_v56  ;;  %1148 = vmatprep.subr.bf16.mxu1 %v1386_v0  ;;  %v1641_v26 = vpop.eup %1357 }
  0x37   :  { %1196 = vmatprep.subr.bf16.mxu0 %v1386_v0  ;;  %v1654_v34 = vrot.slane %v1641_v26, %v186_v21  ;;  %v1657_v35 = vrot.slane %v1641_v26, %v194_v22  ;;  %v1705_v58 = vrot.slane %v1641_v26, %v182_v48  ;;  %v1708_v61 = vrot.slane %v1641_v26, %v190_v51  ;;  %v421_v21 = vld [vmem:[%s2089_s1 + $0x218] sm:$0xff]  ;;  %v55_v48 = vld [vmem:[#allocation2 + $0xa0] sm:$0xff] }
  0x38   :  { %v62_v51 = vld [vmem:[#allocation2 + $0xd8] sm:$0xff] }
  0x39   :  { %1150 = vmatpush1.bf16.msra.mxu1 %v1149_v62  ;;  %v211_v39 = vmul.f32 %v1654_v34, %v36_v28  ;;  %v213_v40 = vmul.f32 %v1657_v35, %v38_v29  ;;  %v1712_v62 = vpack.c.bf16 %v417_v57, %v416_v55  ;;  %v210_v5 = vmul.f32 %v1705_v58, %v35_v60  ;;  %v47_v28 = vld [vmem:[#allocation2 + $0x60] sm:$0xff] }
  0x3a   :  { %1198 = vmatpush1.bf16.msra.mxu0 %v1588_v1  ;;  %1151 = vmatprep.subr.bf16.mxu1 %v1386_v0  ;;  %v217_v14 = vmul.f32 %v1654_v34, %v42_v4  ;;  %v219_v19 = vmul.f32 %v1657_v35, %v44_v6  ;;  %v216_v22 = vmul.f32 %v1705_v58, %v41_v10  ;;  %v68_v4 = vld [vmem:[#allocation2 + $0x108] sm:$0xff] }
  0x3b   :  { %1199 = vmatprep.subr.bf16.mxu0 %v1386_v0  ;;  %575 = vmatprep.mubr.f32.mxu1 %v211_v39  ;;  %v218_v25 = vmul.f32 %v1708_v61, %v43_v15  ;;  %v1221_v29 = vpack.c.bf16 %v421_v21, %v420_v20  ;;  %v225_v37 = vmul.f32 %v1657_v35, %v50_v23  ;;  %v423_v39 = vld [vmem:[%s2089_s1 + $0x228] sm:$0xff]  ;;  %v67_v15 = vld [vmem:[#allocation2 + $0x100] sm:$0xff]  ;;  %v74_v20 = vld [vmem:[#allocation2 + $0x138] sm:$0xff] }
  0x3c   :  { %760 = vmatprep.mubr.f32.mxu0 %v213_v40  ;;  %v222_v40 = vmul.f32 %v1705_v58, %v47_v28  ;;  %v229_v43 = vmul.f32 %v1654_v34, %v54_v33  ;;  %v231_v46 = vmul.f32 %v1657_v35, %v56_v38  ;;  %v230_v55 = vmul.f32 %v1708_v61, %v55_v48  ;;  %v427_v6 = vld [vmem:[%s2089_s1 + $0x248] sm:$0xff]  ;;  %v428_v21 = vld [vmem:[%s2089_s1 + $0x250] sm:$0xff]  ;;  %v78_v33 = vld [vmem:[#allocation2 + $0x158] sm:$0xff] }
  0x3d   :  { %1153 = vmatpush1.bf16.msra.mxu1 %v1152_v7  ;;  %v212_v7 = vmul.f32 %v1708_v61, %v37_v63  ;;  %v237_v60 = vmul.f32 %v1657_v35, %v62_v51  ;;  %v61_v63 = vld [vmem:[#allocation2 + $0xd0] sm:$0xff]  ;;  %v241_v10 = vmul.f32 %v1654_v34, %v66_v3  ;;  %v249_v28 = vmul.f32 %v1657_v35, %v74_v20  ;;  %v430_v38 = vld [vmem:[%s2089_s1 + $0x260] sm:$0xff]  ;;  %v86_v48 = vld [vmem:[#allocation2 + $0x198] sm:$0xff] }
  0x3e   :  { %1201 = vmatpush1.bf16.msra.mxu0 %v1605_v9  ;;  %1154 = vmatprep.subr.bf16.mxu1 %v1386_v0  ;;  %v433_v51 = vld [vmem:[%s2089_s1 + $0x278] sm:$0xff]  ;;  %v435_v3 = vld [vmem:[%s2089_s1 + $0x288] sm:$0xff] }
  0x3f   :  { %1202 = vmatprep.subr.bf16.mxu0 %v1386_v0 }
  0x41   :  { %1156 = vmatpush1.bf16.msra.mxu1 %v1155_v16  ;;  %v48_v16 = vld [vmem:[#allocation2 + $0x68] sm:$0xff] }
  0x42   :  { %1204 = vmatpush1.bf16.msra.mxu0 %v1624_v17  ;;  %1157 = vmatprep.subr.bf16.mxu1 %v1386_v0 }
  0x43   :  { %1205 = vmatprep.subr.bf16.mxu0 %v1386_v0 }
  0x45   :  { %1159 = vmatpush1.bf16.msra.mxu1 %v1158_v27  ;;  %v223_v27 = vmul.f32 %v1654_v34, %v48_v16 }
  0x46   :  { %1207 = vmatpush1.bf16.msra.mxu0 %v1645_v31  ;;  %1160 = vmatprep.subr.bf16.mxu1 %v1386_v0 }
  0x47   :  { %1208 = vmatprep.subr.bf16.mxu0 %v1386_v0 }
  0x49   :  { %1162 = vmatpush1.bf16.msra.mxu1 %v1161_v41  ;;  %v224_v41 = vmul.f32 %v1708_v61, %v49_v32 }
  0x4a   :  { %1210 = vmatpush1.bf16.msra.mxu0 %v1670_v42  ;;  %1163 = vmatprep.subr.bf16.mxu1 %v1386_v0 }
  0x4b   :  { %1211 = vmatprep.subr.bf16.mxu0 %v1386_v0 }
  0x4d   :  { %1165 = vmatpush1.bf16.msra.mxu1 %v1164_v49  ;;  %v60_v49 = vld [vmem:[#allocation2 + $0xc8] sm:$0xff] }
  0x4e   :  { %1213 = vmatpush1.bf16.msra.mxu0 %v1689_v52  ;;  %1166 = vmatprep.subr.bf16.mxu1 %v1386_v0  ;;  %v235_v57 = vmul.f32 %v1654_v34, %v60_v49  ;;  %v432_v49 = vld [vmem:[%s2089_s1 + $0x270] sm:$0xff] }
  0x4f   :  { %1214 = vmatprep.subr.bf16.mxu0 %v1386_v0 }
  0x51   :  { %1168 = vmatpush1.bf16.msra.mxu1 %v1167_v59  ;;  %v59_v59 = vld [vmem:[#allocation2 + $0xc0] sm:$0xff] }
  0x52   :  { %1216 = vmatpush1.bf16.msra.mxu0 %v1712_v62  ;;  %1247 = vmatprep.subr.bf16.mxu1 %v1386_v0 }
  0x53   :  { %1217 = vmatprep.subr.bf16.mxu0 %v1386_v0 }
  0x54   :  { %576 = vmatmul.mubr.f32.vlgmr.msra.gmra.mrb[0].mxu1 %v210_v5  ;;  %v426_v5 = vld [vmem:[%s2089_s1 + $0x240] sm:$0xff] }
  0x55   :  { %761 = vmatmul.mubr.f32.vlgmr.msra.gmra.mrb[0].mxu0 %v212_v7  ;;  %1263 = vmatpush1.bf16.msra.mxu1 %v1439_v8  ;;  %v422_v8 = vld [vmem:[%s2089_s1 + $0x220] sm:$0xff]  ;;  %v234_v7 = vmul.f32 %v1705_v58, %v59_v59  ;;  %v1230_v16 = vpack.c.bf16 %v427_v6, %v426_v5  ;;  %v90_v59 = vld [vmem:[#allocation2 + $0x1b8] sm:$0xff] }
  0x56   :  { %1219 = vmatpush1.bf16.msra.mxu0 %v1218_v11  ;;  %580 = vmatprep.mubr.f32.mxu1 %v217_v14  ;;  %v1224_v47 = vpack.c.bf16 %v423_v39, %v422_v8  ;;  %v65_v11 = vld [vmem:[#allocation2 + $0xf0] sm:$0xff]  ;;  %v243_v14 = vmul.f32 %v1657_v35, %v68_v4  ;;  %v431_v8 = vld [vmem:[%s2089_s1 + $0x268] sm:$0xff]  ;;  %v265_v6 = vmul.f32 %v1654_v34, %v90_v59 }
  0x57   :  { %765 = vmatprep.mubr.f32.mxu0 %v219_v19  ;;  %1220 = vmatprep.subr.bf16.mxu0 %v1386_v0  ;;  %v72_v19 = vld [vmem:[#allocation2 + $0x128] sm:$0xff]  ;;  %v240_v23 = vmul.f32 %v1705_v58, %v65_v11 }
  0x58   :  { %581 = vmatmul.mubr.f32.gmra.mrb[2].mxu1 %v216_v22  ;;  %1248 = vmatprep.subr.bf16.mxu1 %v1386_v0  ;;  %v429_v22 = vld [vmem:[%s2089_s1 + $0x258] sm:$0xff] }
  0x59   :  { %766 = vmatmul.mubr.f32.gmra.mrb[2].mxu0 %v218_v25  ;;  %585 = vmatprep.mubr.f32.mxu1 %v223_v27  ;;  %v247_v25 = vmul.f32 %v1654_v34, %v72_v19  ;;  %v71_v27 = vld [vmem:[#allocation2 + $0x120] sm:$0xff]  ;;  %v1233_v32 = vpack.c.bf16 %v429_v22, %v428_v21 }
  0x5a   :  { %1222 = vmatpush1.bf16.msra.mxu0 %v1221_v29  ;;  %1264 = vmatpush1.bf16.msra.mxu1 %v1449_v12  ;;  %v228_v12 = vmul.f32 %v1705_v58, %v53_v45  ;;  %v73_v29 = vld [vmem:[#allocation2 + $0x130] sm:$0xff]  ;;  %v246_v39 = vmul.f32 %v1705_v58, %v71_v27  ;;  %v79_v45 = vld [vmem:[#allocation2 + $0x160] sm:$0xff]  ;;  %v202_v27 = vsub.s32 5, %v1613_v13 }
  0x5b   :  { %770 = vmatprep.mubr.f32.mxu0 %v225_v37  ;;  %1223 = vmatprep.subr.bf16.mxu0 %v1386_v0  ;;  %v80_v37 = vld [vmem:[#allocation2 + $0x168] sm:$0xff]  ;;  %v254_v54 = vmul.f32 %v1708_v61, %v79_v45  ;;  %v107_v45 = vld [vmem:[#allocation2 + $0x240] sm:$0xff] }
  0x5c   :  { %586 = vmatmul.mubr.f32.gmra.mrb[4].mxu1 %v222_v40  ;;  %1249 = vmatprep.subr.bf16.mxu1 %v1386_v0  ;;  %v248_v40 = vmul.f32 %v1708_v61, %v73_v29 }
  0x5d   :  { %771 = vmatmul.mubr.f32.gmra.mrb[4].mxu0 %v224_v41  ;;  %590 = vmatprep.mubr.f32.mxu1 %v229_v43  ;;  %v77_v41 = vld [vmem:[#allocation2 + $0x150] sm:$0xff]  ;;  %v255_v43 = vmul.f32 %v1657_v35, %v80_v37 }
  0x5e   :  { %775 = vmatprep.mubr.f32.mxu0 %v231_v46  ;;  %1225 = vmatpush1.bf16.msra.mxu0 %v1224_v47  ;;  %v1236_v46 = vpack.c.bf16 %v431_v8, %v430_v38  ;;  %v84_v47 = vld [vmem:[#allocation2 + $0x188] sm:$0xff]  ;;  %v252_v53 = vmul.f32 %v1705_v58, %v77_v41  ;;  %v101_v37 = vld [vmem:[#allocation2 + $0x210] sm:$0xff]  ;;  %v198_v38 = vsub.s32 4, %v1613_v13 }
  0x5f   :  { %1265 = vmatpush1.bf16.msra.mxu1 %v1466_v18  ;;  %1226 = vmatprep.subr.bf16.mxu0 %v1386_v0  ;;  %v236_v18 = vmul.f32 %v1708_v61, %v61_v63  ;;  %v92_v63 = vld [vmem:[#allocation2 + $0x1c8] sm:$0xff]  ;;  %v276_v41 = vmul.f32 %v1705_v58, %v101_v37  ;;  %v143_v37 = vld [vmem:[#allocation2 + $0x360] sm:$0xff] }
  0x60   :  { %591 = vmatmul.mubr.f32.gmra.mrb[6].mxu1 %v228_v12  ;;  %1250 = vmatprep.subr.bf16.mxu1 %v1386_v0  ;;  %v83_v12 = vld [vmem:[#allocation2 + $0x180] sm:$0xff] }
  0x61   :  { %776 = vmatmul.mubr.f32.gmra.mrb[6].mxu0 %v230_v55  ;;  %595 = vmatprep.mubr.f32.mxu1 %v235_v57  ;;  %v261_v55 = vmul.f32 %v1657_v35, %v86_v48  ;;  %v85_v57 = vld [vmem:[#allocation2 + $0x190] sm:$0xff]  ;;  %v258_v4 = vmul.f32 %v1705_v58, %v83_v12  ;;  %v39_v48 = vld [vmem:[#allocation2 + $0x20] sm:$0xff] }
  0x62   :  { %780 = vmatprep.mubr.f32.mxu0 %v237_v60  ;;  %1228 = vmatpush1.bf16.msra.mxu0 %v1227_v2  ;;  %v1239_v60 = vpack.c.bf16 %v433_v51, %v432_v49  ;;  %v434_v2 = vld [vmem:[%s2089_s1 + $0x280] sm:$0xff]  ;;  %v260_v5 = vmul.f32 %v1708_v61, %v85_v57  ;;  %v46_v49 = vld [vmem:[#allocation2 + $0x58] sm:$0xff]  ;;  %v282_v51 = vmul.f32 %v1705_v58, %v107_v45  ;;  %v45_v12 = vld [vmem:[#allocation2 + $0x50] sm:$0xff] }
  0x63   :  { %1266 = vmatpush1.bf16.msra.mxu1 %v1483_v24  ;;  %1229 = vmatprep.subr.bf16.mxu0 %v1386_v0  ;;  %v242_v24 = vmul.f32 %v1708_v61, %v67_v15  ;;  %v1242_v11 = vpack.c.bf16 %v435_v3, %v434_v2  ;;  %v436_v15 = vld [vmem:[%s2089_s1 + $0x290] sm:$0xff]  ;;  %v52_v57 = vld [vmem:[#allocation2 + $0x88] sm:$0xff]  ;;  %v51_v3 = vld [vmem:[#allocation2 + $0x80] sm:$0xff] }
  0x64   :  { %596 = vmatmul.mubr.f32.gmra.mrb[8].mxu1 %v234_v7  ;;  %1251 = vmatprep.subr.bf16.mxu1 %v1386_v0  ;;  %v267_v7 = vmul.f32 %v1657_v35, %v92_v63  ;;  %v119_v63 = vld [vmem:[#allocation2 + $0x2a0] sm:$0xff]  ;;  %v81_v45 = vld [vmem:[#allocation2 + $0x170] sm:$0xff] }
  0x65   :  { %781 = vmatmul.mubr.f32.gmra.mrb[8].mxu0 %v236_v18  ;;  %600 = vmatprep.mubr.f32.mxu1 %v241_v10  ;;  %v91_v18 = vld [vmem:[#allocation2 + $0x1c0] sm:$0xff]  ;;  %v96_v10 = vld [vmem:[#allocation2 + $0x1e8] sm:$0xff] }
  0x66   :  { %785 = vmatprep.mubr.f32.mxu0 %v243_v14  ;;  %1231 = vmatpush1.bf16.msra.mxu0 %v1230_v16  ;;  %v98_v14 = vld [vmem:[#allocation2 + $0x1f8] sm:$0xff]  ;;  %v266_v20 = vmul.f32 %v1708_v61, %v91_v18  ;;  %v271_v21 = vmul.f32 %v1654_v34, %v96_v10  ;;  %v57_v10 = vld [vmem:[#allocation2 + $0xb0] sm:$0xff] }
  0x67   :  { %1232 = vmatprep.subr.bf16.mxu0 %v1386_v0  ;;  %1267 = vmatpush1.bf16.msra.mxu1 %v1500_v30  ;;  %v253_v30 = vmul.f32 %v1654_v34, %v78_v33  ;;  %v437_v16 = vld [vmem:[%s2089_s1 + $0x298] sm:$0xff]  ;;  %v273_v22 = vmul.f32 %v1657_v35, %v98_v14  ;;  %v64_v14 = vld [vmem:[#allocation2 + $0xe8] sm:$0xff] }
  0x68   :  { %601 = vmatmul.mubr.f32.gmra.mrb[10].mxu1 %v240_v23  ;;  %1252 = vmatprep.subr.bf16.mxu1 %v1386_v0  ;;  %v97_v23 = vld [vmem:[#allocation2 + $0x1f0] sm:$0xff] }
  0x69   :  { %786 = vmatmul.mubr.f32.gmra.mrb[10].mxu0 %v242_v24  ;;  %605 = vmatprep.mubr.f32.mxu1 %v247_v25  ;;  %v102_v24 = vld [vmem:[#allocation2 + $0x218] sm:$0xff]  ;;  %v1245_v25 = vpack.c.bf16 %v437_v16, %v436_v15 }
  0x6a   :  { %790 = vmatprep.mubr.f32.mxu0 %v249_v28  ;;  %1234 = vmatpush1.bf16.msra.mxu0 %v1233_v32  ;;  %v104_v28 = vld [vmem:[#allocation2 + $0x228] sm:$0xff]  ;;  %v272_v32 = vmul.f32 %v1708_v61, %v97_v23  ;;  %v277_v33 = vmul.f32 %v1654_v34, %v102_v24 }
  0x6b   :  { %1235 = vmatprep.subr.bf16.mxu0 %v1386_v0  ;;  %1268 = vmatpush1.bf16.msra.mxu1 %v1517_v36  ;;  %v259_v36 = vmul.f32 %v1654_v34, %v84_v47  ;;  %v279_v8 = vmul.f32 %v1657_v35, %v104_v28  ;;  %v69_v28 = vld [vmem:[#allocation2 + $0x110] sm:$0xff] }
  0x6c   :  { %606 = vmatmul.mubr.f32.gmra.mrb[12].mxu1 %v246_v39  ;;  %1253 = vmatprep.subr.bf16.mxu1 %v1386_v0  ;;  %v103_v39 = vld [vmem:[#allocation2 + $0x220] sm:$0xff] }
  0x6d   :  { %791 = vmatmul.mubr.f32.gmra.mrb[12].mxu0 %v248_v40  ;;  %610 = vmatprep.mubr.f32.mxu1 %v253_v30  ;;  %v1852_v40 = vrot.slane %v1641_v26, %v202_v27  ;;  %v40_v30 = vld [vmem:[#allocation2 + $0x28] sm:$0xff]  ;;  %v278_v13 = vmul.f32 %v1708_v61, %v103_v39  ;;  %v150_v39 = vld [vmem:[#allocation2 + $0x398] sm:$0xff] }
  0x6e   :  { %795 = vmatprep.mubr.f32.mxu0 %v255_v43  ;;  %1237 = vmatpush1.bf16.msra.mxu0 %v1236_v46  ;;  %v1860_v46 = vrot.slane %v1641_v26, %v198_v38 }
  0x6f   :  { %1238 = vmatprep.subr.bf16.mxu0 %v1386_v0  ;;  %1269 = vmatpush1.bf16.msra.mxu1 %v1537_v44  ;;  %v89_v44 = vld [vmem:[#allocation2 + $0x1b0] sm:$0xff]  ;;  %v215_v47 = vmul.f32 %v1852_v40, %v40_v30  ;;  %v227_v2 = vmul.f32 %v1852_v40, %v52_v57 }
  0x70   :  { %611 = vmatmul.mubr.f32.gmra.mrb[14].mxu1 %v252_v53  ;;  %1254 = vmatprep.subr.bf16.mxu1 %v1386_v0  ;;  %v264_v19 = vmul.f32 %v1705_v58, %v89_v44  ;;  %v214_v53 = vmul.f32 %v1860_v46, %v39_v48  ;;  %v220_v59 = vmul.f32 %v1860_v46, %v45_v12  ;;  %v88_v48 = vld [vmem:[#allocation2 + $0x1a8] sm:$0xff]  ;;  %v94_v12 = vld [vmem:[#allocation2 + $0x1d8] sm:$0xff] }
  0x71   :  { %796 = vmatmul.mubr.f32.gmra.mrb[14].mxu0 %v254_v54  ;;  %615 = vmatprep.mubr.f32.mxu1 %v259_v36  ;;  %v113_v54 = vld [vmem:[#allocation2 + $0x270] sm:$0xff]  ;;  %v221_v36 = vmul.f32 %v1852_v40, %v46_v49  ;;  %v232_v15 = vmul.f32 %v1860_v46, %v57_v10  ;;  %v256_v49 = vmul.f32 %v1860_v46, %v81_v45  ;;  %v106_v10 = vld [vmem:[#allocation2 + $0x238] sm:$0xff] }
  0x72   :  { %800 = vmatprep.mubr.f32.mxu0 %v261_v55  ;;  %1240 = vmatpush1.bf16.msra.mxu0 %v1239_v60  ;;  %v120_v55 = vld [vmem:[#allocation2 + $0x2a8] sm:$0xff] }
  0x73   :  { %1241 = vmatprep.subr.bf16.mxu0 %v1386_v0  ;;  %1270 = vmatpush1.bf16.msra.mxu1 %v1554_v50  ;;  %v95_v50 = vld [vmem:[#allocation2 + $0x1e0] sm:$0xff]  ;;  %v295_v60 = vmul.f32 %v1654_v34, %v120_v55 }
  0x74   :  { %616 = vmatmul.mubr.f32.gmra.mrb[16].mxu1 %v258_v4  ;;  %1255 = vmatprep.subr.bf16.mxu1 %v1386_v0  ;;  %v270_v29 = vmul.f32 %v1705_v58, %v95_v50  ;;  %v126_v4 = vld [vmem:[#allocation2 + $0x2d8] sm:$0xff] }
  0x75   :  { %801 = vmatmul.mubr.f32.gmra.mrb[16].mxu0 %v260_v5  ;;  %620 = vmatprep.mubr.f32.mxu1 %v265_v6  ;;  %v58_v5 = vld [vmem:[#allocation2 + $0xb8] sm:$0xff]  ;;  %v226_v6 = vmul.f32 %v1860_v46, %v51_v3  ;;  %v301_v44 = vmul.f32 %v1654_v34, %v126_v4  ;;  %v100_v3 = vld [vmem:[#allocation2 + $0x208] sm:$0xff] }
  0x76   :  { %805 = vmatprep.mubr.f32.mxu0 %v267_v7  ;;  %1243 = vmatpush1.bf16.msra.mxu0 %v1242_v11  ;;  %v125_v7 = vld [vmem:[#allocation2 + $0x2d0] sm:$0xff]  ;;  %v233_v18 = vmul.f32 %v1852_v40, %v58_v5  ;;  %v132_v11 = vld [vmem:[#allocation2 + $0x308] sm:$0xff]  ;;  %v138_v50 = vld [vmem:[#allocation2 + $0x338] sm:$0xff] }
  0x77   :  { %1244 = vmatprep.subr.bf16.mxu0 %v1386_v0  ;;  %1271 = vmatpush1.bf16.msra.mxu1 %v1571_v56  ;;  %v108_v56 = vld [vmem:[#allocation2 + $0x248] sm:$0xff]  ;;  %v307_v16 = vmul.f32 %v1654_v34, %v132_v11  ;;  %v313_v24 = vmul.f32 %v1654_v34, %v138_v50 }
  0x78   :  { %621 = vmatmul.mubr.f32.gmra.mrb[18].mxu1 %v264_v19  ;;  %1256 = vmatprep.subr.bf16.mxu1 %v1386_v0  ;;  %v283_v43 = vmul.f32 %v1654_v34, %v108_v56  ;;  %v131_v19 = vld [vmem:[#allocation2 + $0x300] sm:$0xff]  ;;  %v82_v56 = vld [vmem:[#allocation2 + $0x178] sm:$0xff] }
  0x79   :  { %806 = vmatmul.mubr.f32.gmra.mrb[18].mxu0 %v266_v20  ;;  %625 = vmatprep.mubr.f32.mxu1 %v271_v21  ;;  %v239_v20 = vmul.f32 %v1852_v40, %v64_v14  ;;  %v63_v21 = vld [vmem:[#allocation2 + $0xe0] sm:$0xff] }
  0x7a   :  { %810 = vmatprep.mubr.f32.mxu0 %v273_v22  ;;  %1246 = vmatpush1.bf16.msra.mxu0 %v1245_v25  ;;  %v70_v22 = vld [vmem:[#allocation2 + $0x118] sm:$0xff]  ;;  %v238_v23 = vmul.f32 %v1860_v46, %v63_v21  ;;  %v137_v25 = vld [vmem:[#allocation2 + $0x330] sm:$0xff]  ;;  %v112_v21 = vld [vmem:[#allocation2 + $0x268] sm:$0xff] }
  0x7b   :  { %1272 = vmatpush1.bf16.msra.mxu1 %v1588_v1  ;;  %v114_v1 = vld [vmem:[#allocation2 + $0x278] sm:$0xff]  ;;  %v245_v27 = vmul.f32 %v1852_v40, %v70_v22 }
  0x7c   :  { %626 = vmatmul.mubr.f32.gmra.mrb[20].mxu1 %v270_v29  ;;  %1257 = vmatprep.subr.bf16.mxu1 %v1386_v0  ;;  %v289_v26 = vmul.f32 %v1654_v34, %v114_v1  ;;  %v144_v29 = vld [vmem:[#allocation2 + $0x368] sm:$0xff] }
  0x7d   :  { %811 = vmatmul.mubr.f32.gmra.mrb[20].mxu0 %v272_v32  ;;  %630 = vmatprep.mubr.f32.mxu1 %v277_v33  ;;  %v76_v32 = vld [vmem:[#allocation2 + $0x148] sm:$0xff]  ;;  %v319_v33 = vmul.f32 %v1654_v34, %v144_v29 }
  0x7e   :  { %815 = vmatprep.mubr.f32.mxu0 %v279_v8  ;;  %v251_v38 = vmul.f32 %v1852_v40, %v76_v32  ;;  %v75_v8 = vld [vmem:[#allocation2 + $0x140] sm:$0xff] }
  0x7f   :  { %1273 = vmatpush1.bf16.msra.mxu1 %v1605_v9  ;;  %v288_v9 = vmul.f32 %v1705_v58, %v113_v54  ;;  %v250_v30 = vmul.f32 %v1860_v46, %v75_v8  ;;  %v87_v54 = vld [vmem:[#allocation2 + $0x1a0] sm:$0xff] }
  0x80   :  { %631 = vmatmul.mubr.f32.gmra.mrb[22].mxu1 %v276_v41  ;;  %1258 = vmatprep.subr.bf16.mxu1 %v1386_v0  ;;  %v325_v41 = vmul.f32 %v1654_v34, %v150_v39  ;;  %v262_v57 = vmul.f32 %v1860_v46, %v87_v54  ;;  %v115_v32 = vld [vmem:[#allocation2 + $0x280] sm:$0xff] }
  0x81   :  { %816 = vmatmul.mubr.f32.gmra.mrb[22].mxu0 %v278_v13  ;;  %635 = vmatprep.mubr.f32.mxu1 %v283_v43  ;;  %v149_v13 = vld [vmem:[#allocation2 + $0x390] sm:$0xff]  ;;  %v257_v43 = vmul.f32 %v1852_v40, %v82_v56 }
  0x82   :  { %1097 = vmatprep.mubr.msk.f32.mxu0 %vm438_vm0, %v215_v47  ;;  %v156_v47 = vld [vmem:[#allocation2 + $0x3c8] sm:$0xff]  ;;  %v324_v1 = vmul.f32 %v1705_v58, %v149_v13  ;;  %v121_v56 = vld [vmem:[#allocation2 + $0x2b0] sm:$0xff]  ;;  %v130_v13 = vld [vmem:[#allocation2 + $0x2f8] sm:$0xff] }
  0x83   :  { %1274 = vmatpush1.bf16.msra.mxu1 %v1624_v17  ;;  %v294_v17 = vmul.f32 %v1705_v58, %v119_v63  ;;  %v93_v63 = vld [vmem:[#allocation2 + $0x1d0] sm:$0xff] }
  0x84   :  { %636 = vmatmul.mubr.f32.gmra.mrb[24].mxu1 %v282_v51  ;;  %1259 = vmatprep.subr.bf16.mxu1 %v1386_v0  ;;  %v331_v51 = vmul.f32 %v1654_v34, %v156_v47  ;;  %v268_v5 = vmul.f32 %v1860_v46, %v93_v63 }
  0x85   :  { %946 = vmatmul.mubr.f32.vlgmr.msra.gmra.mrb[0].mxu0 %v214_v53  ;;  %640 = vmatprep.mubr.f32.mxu1 %v289_v26  ;;  %v155_v53 = vld [vmem:[#allocation2 + $0x3c0] sm:$0xff]  ;;  %v263_v26 = vmul.f32 %v1852_v40, %v88_v48 }
  0x86   :  { %1098 = vmatprep.mubr.msk.f32.mxu0 %vm438_vm0, %v221_v36  ;;  %v162_v36 = vld [vmem:[#allocation2 + $0x3f8] sm:$0xff]  ;;  %v330_v55 = vmul.f32 %v1705_v58, %v155_v53  ;;  %v127_v48 = vld [vmem:[#allocation2 + $0x2e0] sm:$0xff]  ;;  %v136_v53 = vld [vmem:[#allocation2 + $0x328] sm:$0xff] }
  0x87   :  { %1275 = vmatpush1.bf16.msra.mxu1 %v1645_v31  ;;  %v300_v31 = vmul.f32 %v1705_v58, %v125_v7  ;;  %v99_v7 = vld [vmem:[#allocation2 + $0x200] sm:$0xff] }
  0x88   :  { %641 = vmatmul.mubr.f32.gmra.mrb[26].mxu1 %v288_v9  ;;  %1260 = vmatprep.subr.bf16.mxu1 %v1386_v0  ;;  %v337_v9 = vmul.f32 %v1654_v34, %v162_v36  ;;  %v274_v14 = vmul.f32 %v1860_v46, %v99_v7 }
  0x89   :  { %951 = vmatmul.mubr.f32.gmra.mrb[2].mxu0 %v220_v59  ;;  %645 = vmatprep.mubr.f32.mxu1 %v295_v60  ;;  %v161_v59 = vld [vmem:[#allocation2 + $0x3f0] sm:$0xff]  ;;  %v269_v60 = vmul.f32 %v1852_v40, %v94_v12 }
  0x8a   :  { %1099 = vmatprep.mubr.msk.f32.mxu0 %vm438_vm0, %v227_v2  ;;  %v168_v2 = vld [vmem:[#allocation2 + $0x428] sm:$0xff]  ;;  %v336_v4 = vmul.f32 %v1705_v58, %v161_v59  ;;  %v133_v12 = vld [vmem:[#allocation2 + $0x310] sm:$0xff]  ;;  %v142_v59 = vld [vmem:[#allocation2 + $0x358] sm:$0xff] }
  0x8b   :  { %1276 = vmatpush1.bf16.msra.mxu1 %v1670_v42  ;;  %v306_v42 = vmul.f32 %v1705_v58, %v131_v19  ;;  %v105_v19 = vld [vmem:[#allocation2 + $0x230] sm:$0xff] }
  0x8c   :  { %646 = vmatmul.mubr.f32.gmra.mrb[28].mxu1 %v294_v17  ;;  %1261 = vmatprep.subr.bf16.mxu1 %v1386_v0  ;;  %v343_v17 = vmul.f32 %v1654_v34, %v168_v2  ;;  %v280_v22 = vmul.f32 %v1860_v46, %v105_v19 }
  0x8d   :  { %956 = vmatmul.mubr.f32.gmra.mrb[4].mxu0 %v226_v6  ;;  %650 = vmatprep.mubr.f32.mxu1 %v301_v44  ;;  %v167_v6 = vld [vmem:[#allocation2 + $0x420] sm:$0xff]  ;;  %v275_v44 = vmul.f32 %v1852_v40, %v100_v3 }
  0x8e   :  { %1100 = vmatprep.mubr.msk.f32.mxu0 %vm438_vm0, %v233_v18  ;;  %v174_v18 = vld [vmem:[#allocation2 + $0x458] sm:$0xff]  ;;  %v342_v11 = vmul.f32 %v1705_v58, %v167_v6  ;;  %v139_v3 = vld [vmem:[#allocation2 + $0x340] sm:$0xff]  ;;  %v148_v6 = vld [vmem:[#allocation2 + $0x388] sm:$0xff] }
  0x8f   :  { %1277 = vmatpush1.bf16.msra.mxu1 %v1689_v52  ;;  %v312_v52 = vmul.f32 %v1705_v58, %v137_v25  ;;  %v116_v25 = vld [vmem:[#allocation2 + $0x288] sm:$0xff] }
  0x90   :  { %651 = vmatmul.mubr.f32.gmra.mrb[30].mxu1 %v300_v31  ;;  %1262 = vmatprep.subr.bf16.mxu1 %v1386_v0  ;;  %v244_v0 = vmul.f32 %v1860_v46, %v69_v28  ;;  %v349_v31 = vmul.f32 %v1654_v34, %v174_v18  ;;  %v287_v34 = vmul.f32 %v1852_v40, %v112_v21  ;;  %v151_v21 = vld [vmem:[#allocation2 + $0x3a0] sm:$0xff] }
  0x91   :  { %961 = vmatmul.mubr.f32.gmra.mrb[6].mxu0 %v232_v15  ;;  %655 = vmatprep.mubr.f32.mxu1 %v307_v16  ;;  %v173_v15 = vld [vmem:[#allocation2 + $0x450] sm:$0xff]  ;;  %v281_v16 = vmul.f32 %v1852_v40, %v106_v10  ;;  %v291_v29 = vmul.f32 %v1657_v35, %v116_v25 }
  0x92   :  { %1101 = vmatprep.mubr.msk.f32.mxu0 %vm438_vm0, %v239_v20  ;;  %v110_v20 = vld [vmem:[#allocation2 + $0x258] sm:$0xff]  ;;  %v348_v50 = vmul.f32 %v1705_v58, %v173_v15  ;;  %v145_v10 = vld [vmem:[#allocation2 + $0x370] sm:$0xff] }
  0x93   :  { %1278 = vmatpush1.bf16.msra.mxu1 %v1712_v62  ;;  %v318_v62 = vmul.f32 %v1705_v58, %v143_v37  ;;  %v124_v37 = vld [vmem:[#allocation2 + $0x2c8] sm:$0xff]  ;;  %v154_v15 = vld [vmem:[#allocation2 + $0x3b8] sm:$0xff] }
  0x94   :  { %656 = vmatmul.mubr.f32.gmra.mrb[32].mxu1 %v306_v42  ;;  %v285_v42 = vmul.f32 %v1657_v35, %v110_v20 }
  0x95   :  { %966 = vmatmul.mubr.f32.gmra.mrb[8].mxu0 %v238_v23  ;;  %660 = vmatprep.mubr.f32.mxu1 %v313_v24  ;;  %v109_v23 = vld [vmem:[#allocation2 + $0x250] sm:$0xff]  ;;  %v111_v24 = vld [vmem:[#allocation2 + $0x260] sm:$0xff] }
  0x96   :  { %1102 = vmatprep.mubr.msk.f32.mxu0 %vm438_vm0, %v245_v27  ;;  %v118_v27 = vld [vmem:[#allocation2 + $0x298] sm:$0xff]  ;;  %v284_v28 = vmul.f32 %v1708_v61, %v109_v23  ;;  %v286_v58 = vmul.f32 %v1860_v46, %v111_v24  ;;  %v160_v23 = vld [vmem:[#allocation2 + $0x3e8] sm:$0xff] }
  0x98   :  { %661 = vmatmul.mubr.f32.gmra.mrb[34].mxu1 %v312_v52  ;;  %v293_v52 = vmul.f32 %v1852_v40, %v118_v27  ;;  %v157_v27 = vld [vmem:[#allocation2 + $0x3d0] sm:$0xff] }
  0x99   :  { %971 = vmatmul.mubr.f32.gmra.mrb[10].mxu0 %v244_v0  ;;  %665 = vmatprep.mubr.f32.mxu1 %v319_v33  ;;  %v117_v0 = vld [vmem:[#allocation2 + $0x290] sm:$0xff]  ;;  %v122_v33 = vld [vmem:[#allocation2 + $0x2b8] sm:$0xff] }
  0x9a   :  { %1103 = vmatprep.mubr.msk.f32.mxu0 %vm438_vm0, %v251_v38  ;;  %v290_v38 = vmul.f32 %v1708_v61, %v115_v32  ;;  %v292_v8 = vmul.f32 %v1860_v46, %v117_v0  ;;  %v297_v39 = vmul.f32 %v1657_v35, %v122_v33  ;;  %v166_v32 = vld [vmem:[#allocation2 + $0x418] sm:$0xff] }
  0x9c   :  { %666 = vmatmul.mubr.f32.gmra.mrb[36].mxu1 %v318_v62  ;;  %v299_v62 = vmul.f32 %v1852_v40, %v124_v37  ;;  %v163_v37 = vld [vmem:[#allocation2 + $0x400] sm:$0xff] }
  0x9d   :  { %976 = vmatmul.mubr.f32.gmra.mrb[12].mxu0 %v250_v30  ;;  %670 = vmatprep.mubr.f32.mxu1 %v325_v41  ;;  %v123_v30 = vld [vmem:[#allocation2 + $0x2c0] sm:$0xff]  ;;  %v128_v41 = vld [vmem:[#allocation2 + $0x2e8] sm:$0xff] }
  0x9e   :  { %1104 = vmatprep.mubr.msk.f32.mxu0 %vm438_vm0, %v257_v43  ;;  %v296_v43 = vmul.f32 %v1708_v61, %v121_v56  ;;  %v298_v45 = vmul.f32 %v1860_v46, %v123_v30  ;;  %v303_v47 = vmul.f32 %v1657_v35, %v128_v41  ;;  %v172_v56 = vld [vmem:[#allocation2 + $0x448] sm:$0xff] }
  0xa0   :  { %671 = vmatmul.mubr.f32.gmra.mrb[38].mxu1 %v324_v1  ;;  %v305_v1 = vmul.f32 %v1852_v40, %v130_v13  ;;  %v169_v13 = vld [vmem:[#allocation2 + $0x430] sm:$0xff] }
  0xa1   :  { %981 = vmatmul.mubr.f32.gmra.mrb[14].mxu0 %v256_v49  ;;  %675 = vmatprep.mubr.f32.mxu1 %v331_v51  ;;  %v129_v49 = vld [vmem:[#allocation2 + $0x2f0] sm:$0xff]  ;;  %v134_v51 = vld [vmem:[#allocation2 + $0x318] sm:$0xff] }
  0xa2   :  { %1105 = vmatprep.mubr.msk.f32.mxu0 %vm438_vm0, %v263_v26  ;;  %v302_v26 = vmul.f32 %v1708_v61, %v127_v48  ;;  %v304_v54 = vmul.f32 %v1860_v46, %v129_v49  ;;  %v309_v36 = vmul.f32 %v1657_v35, %v134_v51  ;;  %v178_v48 = vld [vmem:[#allocation2 + $0x478] sm:$0xff] }
  0xa4   :  { %676 = vmatmul.mubr.f32.gmra.mrb[40].mxu1 %v330_v55  ;;  %v311_v55 = vmul.f32 %v1852_v40, %v136_v53  ;;  %v175_v53 = vld [vmem:[#allocation2 + $0x460] sm:$0xff] }
  0xa5   :  { %986 = vmatmul.mubr.f32.gmra.mrb[16].mxu0 %v262_v57  ;;  %680 = vmatprep.mubr.f32.mxu1 %v337_v9  ;;  %v135_v57 = vld [vmem:[#allocation2 + $0x320] sm:$0xff]  ;;  %v140_v9 = vld [vmem:[#allocation2 + $0x348] sm:$0xff] }
  0xa6   :  { %1106 = vmatprep.mubr.msk.f32.mxu0 %vm438_vm0, %v269_v60  ;;  %v308_v60 = vmul.f32 %v1708_v61, %v133_v12  ;;  %v310_v63 = vmul.f32 %v1860_v46, %v135_v57  ;;  %v315_v2 = vmul.f32 %v1657_v35, %v140_v9 }
  0xa8   :  { %681 = vmatmul.mubr.f32.gmra.mrb[42].mxu1 %v336_v4  ;;  %v317_v4 = vmul.f32 %v1852_v40, %v142_v59 }
  0xa9   :  { %991 = vmatmul.mubr.f32.gmra.mrb[18].mxu0 %v268_v5  ;;  %685 = vmatprep.mubr.f32.mxu1 %v343_v17  ;;  %v141_v5 = vld [vmem:[#allocation2 + $0x350] sm:$0xff]  ;;  %v146_v17 = vld [vmem:[#allocation2 + $0x378] sm:$0xff] }
  0xaa   :  { %1107 = vmatprep.mubr.msk.f32.mxu0 %vm438_vm0, %v275_v44  ;;  %v314_v44 = vmul.f32 %v1708_v61, %v139_v3  ;;  %v316_v7 = vmul.f32 %v1860_v46, %v141_v5  ;;  %v321_v18 = vmul.f32 %v1657_v35, %v146_v17 }
  0xac   :  { %686 = vmatmul.mubr.f32.gmra.mrb[44].mxu1 %v342_v11  ;;  %v323_v11 = vmul.f32 %v1852_v40, %v148_v6 }
  0xad   :  { %996 = vmatmul.mubr.f32.gmra.mrb[20].mxu0 %v274_v14  ;;  %690 = vmatprep.mubr.f32.mxu1 %v349_v31  ;;  %v147_v14 = vld [vmem:[#allocation2 + $0x380] sm:$0xff]  ;;  %v152_v31 = vld [vmem:[#allocation2 + $0x3a8] sm:$0xff] }
  0xae   :  { %1108 = vmatprep.mubr.msk.f32.mxu0 %vm438_vm0, %v281_v16  ;;  %v320_v16 = vmul.f32 %v1708_v61, %v145_v10  ;;  %v322_v19 = vmul.f32 %v1860_v46, %v147_v14  ;;  %v327_v20 = vmul.f32 %v1657_v35, %v152_v31 }
  0xb0   :  { %691 = vmatmul.mubr.f32.gmra.mrb[46].mxu1 %v348_v50  ;;  %v329_v50 = vmul.f32 %v1852_v40, %v154_v15 }
  0xb1   :  { %1001 = vmatmul.mubr.f32.gmra.mrb[22].mxu0 %v280_v22  ;;  %820 = vmatprep.mubr.f32.mxu1 %v285_v42  ;;  %v153_v22 = vld [vmem:[#allocation2 + $0x3b0] sm:$0xff]  ;;  %v158_v42 = vld [vmem:[#allocation2 + $0x3d8] sm:$0xff] }
  0xb2   :  { %1109 = vmatprep.mubr.msk.f32.mxu0 %vm438_vm0, %v287_v34  ;;  %v326_v34 = vmul.f32 %v1708_v61, %v151_v21  ;;  %v328_v24 = vmul.f32 %v1860_v46, %v153_v22  ;;  %v333_v25 = vmul.f32 %v1657_v35, %v158_v42 }
  0xb4   :  { %821 = vmatmul.mubr.f32.vlgmr.msra.gmra.mrb[24].mxu1 %v284_v28  ;;  %v335_v28 = vmul.f32 %v1852_v40, %v160_v23 }
  0xb5   :  { %1006 = vmatmul.mubr.f32.gmra.mrb[24].mxu0 %v286_v58  ;;  %825 = vmatprep.mubr.f32.mxu1 %v291_v29  ;;  %v159_v58 = vld [vmem:[#allocation2 + $0x3e0] sm:$0xff]  ;;  %v164_v29 = vld [vmem:[#allocation2 + $0x408] sm:$0xff] }
  0xb6   :  { %1110 = vmatprep.mubr.msk.f32.mxu0 %vm438_vm0, %v293_v52  ;;  %v332_v52 = vmul.f32 %v1708_v61, %v157_v27  ;;  %v334_v0 = vmul.f32 %v1860_v46, %v159_v58  ;;  %v339_v33 = vmul.f32 %v1657_v35, %v164_v29 }
  0xb8   :  { %826 = vmatmul.mubr.f32.gmra.mrb[26].mxu1 %v290_v38  ;;  %v341_v38 = vmul.f32 %v1852_v40, %v166_v32 }
  0xb9   :  { %1011 = vmatmul.mubr.f32.gmra.mrb[26].mxu0 %v292_v8  ;;  %830 = vmatprep.mubr.f32.mxu1 %v297_v39  ;;  %v165_v8 = vld [vmem:[#allocation2 + $0x410] sm:$0xff]  ;;  %v170_v39 = vld [vmem:[#allocation2 + $0x438] sm:$0xff] }
  0xba   :  { %1111 = vmatprep.mubr.msk.f32.mxu0 %vm438_vm0, %v299_v62  ;;  %v338_v62 = vmul.f32 %v1708_v61, %v163_v37  ;;  %v340_v30 = vmul.f32 %v1860_v46, %v165_v8  ;;  %v345_v41 = vmul.f32 %v1657_v35, %v170_v39 }
  0xbc   :  { %831 = vmatmul.mubr.f32.gmra.mrb[28].mxu1 %v296_v43  ;;  %v347_v43 = vmul.f32 %v1852_v40, %v172_v56 }
  0xbd   :  { %1016 = vmatmul.mubr.f32.gmra.mrb[28].mxu0 %v298_v45  ;;  %835 = vmatprep.mubr.f32.mxu1 %v303_v47  ;;  %v171_v45 = vld [vmem:[#allocation2 + $0x440] sm:$0xff]  ;;  %v176_v47 = vld [vmem:[#allocation2 + $0x468] sm:$0xff] }
  0xbe   :  { %1112 = vmatprep.mubr.msk.f32.mxu0 %vm438_vm0, %v305_v1  ;;  %v344_v1 = vmul.f32 %v1708_v61, %v169_v13  ;;  %v346_v49 = vmul.f32 %v1860_v46, %v171_v45  ;;  %v351_v51 = vmul.f32 %v1657_v35, %v176_v47 }
  0xc0   :  { %836 = vmatmul.mubr.f32.gmra.mrb[30].mxu1 %v302_v26  ;;  %v353_v26 = vmul.f32 %v1852_v40, %v178_v48 }
  0xc1   :  { %1021 = vmatmul.mubr.f32.gmra.mrb[30].mxu0 %v304_v54  ;;  %840 = vmatprep.mubr.f32.mxu1 %v309_v36  ;;  %v177_v54 = vld [vmem:[#allocation2 + $0x470] sm:$0xff]  ;;  %v350_v36 = vmul.f32 %v1708_v61, %v175_v53 }
  0xc2   :  { %1113 = vmatprep.mubr.msk.f32.mxu0 %vm438_vm0, %v311_v55  ;;  %v352_v12 = vmul.f32 %v1860_v46, %v177_v54 }
  0xc4   :  { %841 = vmatmul.mubr.f32.gmra.mrb[32].mxu1 %v308_v60 }
  0xc5   :  { %1026 = vmatmul.mubr.f32.gmra.mrb[32].mxu0 %v310_v63  ;;  %845 = vmatprep.mubr.f32.mxu1 %v315_v2 }
  0xc6   :  { %1114 = vmatprep.mubr.msk.f32.mxu0 %vm438_vm0, %v317_v4 }
  0xc8   :  { %846 = vmatmul.mubr.f32.gmra.mrb[34].mxu1 %v314_v44 }
  0xc9   :  { %1031 = vmatmul.mubr.f32.gmra.mrb[34].mxu0 %v316_v7  ;;  %850 = vmatprep.mubr.f32.mxu1 %v321_v18 }
  0xca   :  { %1115 = vmatprep.mubr.msk.f32.mxu0 %vm438_vm0, %v323_v11 }
  0xcc   :  { %851 = vmatmul.mubr.f32.gmra.mrb[36].mxu1 %v320_v16 }
  0xcd   :  { %1036 = vmatmul.mubr.f32.gmra.mrb[36].mxu0 %v322_v19  ;;  %855 = vmatprep.mubr.f32.mxu1 %v327_v20 }
  0xce   :  { %1116 = vmatprep.mubr.msk.f32.mxu0 %vm438_vm0, %v329_v50 }
  0xd0   :  { %856 = vmatmul.mubr.f32.gmra.mrb[38].mxu1 %v326_v34 }
  0xd1   :  { %1041 = vmatmul.mubr.f32.gmra.mrb[38].mxu0 %v328_v24  ;;  %860 = vmatprep.mubr.f32.mxu1 %v333_v25 }
  0xd2   :  { %1117 = vmatprep.mubr.msk.f32.mxu0 %vm438_vm0, %v335_v28 }
  0xd4   :  { %861 = vmatmul.mubr.f32.gmra.mrb[40].mxu1 %v332_v52 }
  0xd5   :  { %1046 = vmatmul.mubr.f32.gmra.mrb[40].mxu0 %v334_v0  ;;  %865 = vmatprep.mubr.f32.mxu1 %v339_v33 }
  0xd6   :  { %1118 = vmatprep.mubr.msk.f32.mxu0 %vm438_vm0, %v341_v38 }
  0xd8   :  { %866 = vmatmul.mubr.f32.gmra.mrb[42].mxu1 %v338_v62 }
  0xd9   :  { %1051 = vmatmul.mubr.f32.gmra.mrb[42].mxu0 %v340_v30  ;;  %870 = vmatprep.mubr.f32.mxu1 %v345_v41 }
  0xda   :  { %1119 = vmatprep.mubr.msk.f32.mxu0 %vm438_vm0, %v347_v43 }
  0xdc   :  { %871 = vmatmul.mubr.f32.gmra.mrb[44].mxu1 %v344_v1 }
  0xdd   :  { %1056 = vmatmul.mubr.f32.gmra.mrb[44].mxu0 %v346_v49  ;;  %875 = vmatprep.mubr.f32.mxu1 %v351_v51 }
  0xde   :  { %1120 = vmatprep.mubr.msk.f32.mxu0 %vm438_vm0, %v353_v26 }
  0xe0   :  { %876 = vmatmul.mubr.f32.gmra.mrb[46].mxu1 %v350_v36 }
  0xe1   :  { %1061 = vmatmul.mubr.f32.gmra.mrb[46].mxu0 %v352_v12 }
 0x127   :  { %v577_v55 = vpop.f32.mrb[0].mxu1 }
 0x128   :  { %v579_v57 = vpop.f32.mrb[1].mxu1 }
 0x12b   :  { %v582_v35 = vpop.f32.mrb[2].mxu1 }
 0x12c   :  { %v584_v9 = vpop.f32.mrb[3].mxu1 }
 0x12f   :  { %v587_v59 = vpop.f32.mrb[4].mxu1 }
 0x130   :  { %v589_v60 = vpop.f32.mrb[5].mxu1 }
 0x133   :  { %v592_v63 = vpop.f32.mrb[6].mxu1 }
 0x134   :  { %v594_v40 = vpop.f32.mrb[7].mxu1 }
 0x137   :  { %v597_v2 = vpop.f32.mrb[8].mxu1 }
 0x138   :  { %v599_v3 = vpop.f32.mrb[9].mxu1 }
 0x13b   :  { %v602_v4 = vpop.f32.mrb[10].mxu1 }
 0x13c   :  { %v604_v61 = vpop.f32.mrb[11].mxu1 }
 0x13f   :  { %v607_v5 = vpop.f32.mrb[12].mxu1 }
 0x140   :  { %v609_v17 = vpop.f32.mrb[13].mxu1 }
 0x143   :  { %v612_v6 = vpop.f32.mrb[14].mxu1 }
 0x144   :  { %v614_v46 = vpop.f32.mrb[15].mxu1 }
 0x147   :  { %v617_v44 = vpop.f32.mrb[16].mxu1 }
 0x148   :  { %v619_v7 = vpop.f32.mrb[17].mxu1 }
 0x14b   :  { %v622_v18 = vpop.f32.mrb[18].mxu1 }
 0x14c   :  { %v624_v10 = vpop.f32.mrb[19].mxu1 }
 0x14f   :  { %v627_v11 = vpop.f32.mrb[20].mxu1 }
 0x150   :  { %v629_v14 = vpop.f32.mrb[21].mxu1 }
 0x153   :  { %v632_v31 = vpop.f32.mrb[22].mxu1 }
 0x154   :  { %v634_v15 = vpop.f32.mrb[23].mxu1 }
 0x158   :  { %v947_v16 = vpop.f32.mrb[0].mxu0 }
 0x159   :  { %v1279_v19 = vadd.f32 %v947_v16, %v577_v55  ;;  %v949_v20 = vpop.f32.mrb[1].mxu0 }
 0x15b   :  { %1067 = vst.msk [vmem:[%s2091_s3] sm:$0xff] %vm1066_vm1, %v1279_v19 }
 0x15c   :  { %v952_v21 = vpop.f32.mrb[2].mxu0 }
 0x15d   :  { %v1280_v50 = vadd.f32 %v952_v21, %v582_v35  ;;  %v954_v22 = vpop.f32.mrb[3].mxu0 }
 0x15f   :  { %1068 = vst.msk [vmem:[%s2091_s3 + $0x8] sm:$0xff] %vm1066_vm1, %v1280_v50 }
 0x160   :  { %v957_v42 = vpop.f32.mrb[4].mxu0 }
 0x161   :  { %v1281_v23 = vadd.f32 %v957_v42, %v587_v59  ;;  %v959_v34 = vpop.f32.mrb[5].mxu0 }
 0x163   :  { %1069 = vst.msk [vmem:[%s2091_s3 + $0x10] sm:$0xff] %vm1066_vm1, %v1281_v23 }
 0x164   :  { %v962_v24 = vpop.f32.mrb[6].mxu0 }
 0x165   :  { %v1282_v25 = vadd.f32 %v962_v24, %v592_v63  ;;  %v964_v27 = vpop.f32.mrb[7].mxu0 }
 0x167   :  { %1070 = vst.msk [vmem:[%s2091_s3 + $0x18] sm:$0xff] %vm1066_vm1, %v1282_v25 }
 0x168   :  { %v967_v28 = vpop.f32.mrb[8].mxu0 }
 0x169   :  { %v1283_v58 = vadd.f32 %v967_v28, %v597_v2  ;;  %v969_v29 = vpop.f32.mrb[9].mxu0 }
 0x16b   :  { %1071 = vst.msk [vmem:[%s2091_s3 + $0x20] sm:$0xff] %vm1066_vm1, %v1283_v58 }
 0x16c   :  { %v972_v32 = vpop.f32.mrb[10].mxu0 }
 0x16d   :  { %v1284_v52 = vadd.f32 %v972_v32, %v602_v4  ;;  %v974_v0 = vpop.f32.mrb[11].mxu0 }
 0x16f   :  { %1072 = vst.msk [vmem:[%s2091_s3 + $0x28] sm:$0xff] %vm1066_vm1, %v1284_v52 }
 0x170   :  { %v977_v33 = vpop.f32.mrb[12].mxu0 }
 0x171   :  { %v1285_v37 = vadd.f32 %v977_v33, %v607_v5  ;;  %v979_v38 = vpop.f32.mrb[13].mxu0 }
 0x173   :  { %1073 = vst.msk [vmem:[%s2091_s3 + $0x30] sm:$0xff] %vm1066_vm1, %v1285_v37 }
 0x174   :  { %v982_v8 = vpop.f32.mrb[14].mxu0 }
 0x175   :  { %v1286_v39 = vadd.f32 %v982_v8, %v612_v6  ;;  %v984_v56 = vpop.f32.mrb[15].mxu0 }
 0x177   :  { %1074 = vst.msk [vmem:[%s2091_s3 + $0x38] sm:$0xff] %vm1066_vm1, %v1286_v39 }
 0x178   :  { %v987_v62 = vpop.f32.mrb[16].mxu0 }
 0x179   :  { %v1287_v30 = vadd.f32 %v987_v62, %v617_v44  ;;  %v989_v41 = vpop.f32.mrb[17].mxu0 }
 0x17b   :  { %1075 = vst.msk [vmem:[%s2091_s3 + $0x40] sm:$0xff] %vm1066_vm1, %v1287_v30 }
 0x17c   :  { %v992_v13 = vpop.f32.mrb[18].mxu0 }
 0x17d   :  { %v1288_v43 = vadd.f32 %v992_v13, %v622_v18  ;;  %v994_v45 = vpop.f32.mrb[19].mxu0 }
 0x17f   :  { %1076 = vst.msk [vmem:[%s2091_s3 + $0x48] sm:$0xff] %vm1066_vm1, %v1288_v43 }
 0x180   :  { %v997_v47 = vpop.f32.mrb[20].mxu0 }
 0x181   :  { %v1289_v48 = vadd.f32 %v997_v47, %v627_v11  ;;  %v999_v1 = vpop.f32.mrb[21].mxu0 }
 0x183   :  { %1077 = vst.msk [vmem:[%s2091_s3 + $0x50] sm:$0xff] %vm1066_vm1, %v1289_v48 }
 0x184   :  { %v1002_v49 = vpop.f32.mrb[22].mxu0 }
 0x185   :  { %v1290_v51 = vadd.f32 %v1002_v49, %v632_v31  ;;  %v1004_v53 = vpop.f32.mrb[23].mxu0 }
 0x187   :  { %1078 = vst.msk [vmem:[%s2091_s3 + $0x58] sm:$0xff] %vm1066_vm1, %v1290_v51  ;;  %v822_v26 = vpop.f32.mrb[24].mxu1 }
 0x188   :  { %v1007_v54 = vpop.f32.mrb[24].mxu0  ;;  %v824_v36 = vpop.f32.mrb[25].mxu1 }
 0x189   :  { %v1291_v12 = vadd.f32 %v1007_v54, %v822_v26  ;;  %v1009_v55 = vpop.f32.mrb[25].mxu0 }
 0x18b   :  { %1079 = vst.msk [vmem:[%s2091_s3 + $0x60] sm:$0xff] %vm1066_vm1, %v1291_v12  ;;  %v827_v57 = vpop.f32.mrb[26].mxu1 }
 0x18c   :  { %v1012_v35 = vpop.f32.mrb[26].mxu0  ;;  %v829_v9 = vpop.f32.mrb[27].mxu1 }
 0x18d   :  { %v1292_v59 = vadd.f32 %v1012_v35, %v827_v57  ;;  %v1014_v60 = vpop.f32.mrb[27].mxu0 }
 0x18f   :  { %1080 = vst.msk [vmem:[%s2091_s3 + $0x68] sm:$0xff] %vm1066_vm1, %v1292_v59  ;;  %v832_v63 = vpop.f32.mrb[28].mxu1 }
 0x190   :  { %v1017_v40 = vpop.f32.mrb[28].mxu0  ;;  %v834_v2 = vpop.f32.mrb[29].mxu1 }
 0x191   :  { %v1293_v3 = vadd.f32 %v1017_v40, %v832_v63  ;;  %v1019_v4 = vpop.f32.mrb[29].mxu0 }
 0x193   :  { %1081 = vst.msk [vmem:[%s2091_s3 + $0x70] sm:$0xff] %vm1066_vm1, %v1293_v3  ;;  %v837_v61 = vpop.f32.mrb[30].mxu1 }
 0x194   :  { %v1022_v5 = vpop.f32.mrb[30].mxu0  ;;  %v839_v17 = vpop.f32.mrb[31].mxu1 }
 0x195   :  { %v1294_v6 = vadd.f32 %v1022_v5, %v837_v61  ;;  %v1024_v46 = vpop.f32.mrb[31].mxu0 }
 0x197   :  { %1082 = vst.msk [vmem:[%s2091_s3 + $0x78] sm:$0xff] %vm1066_vm1, %v1294_v6  ;;  %v842_v44 = vpop.f32.mrb[32].mxu1 }
 0x198   :  { %v1027_v7 = vpop.f32.mrb[32].mxu0  ;;  %v844_v18 = vpop.f32.mrb[33].mxu1 }
 0x199   :  { %v1295_v10 = vadd.f32 %v1027_v7, %v842_v44  ;;  %v1029_v11 = vpop.f32.mrb[33].mxu0 }
 0x19b   :  { %1083 = vst.msk [vmem:[%s2091_s3 + $0x80] sm:$0xff] %vm1066_vm1, %v1295_v10  ;;  %v847_v14 = vpop.f32.mrb[34].mxu1 }
 0x19c   :  { %v1032_v31 = vpop.f32.mrb[34].mxu0  ;;  %v849_v15 = vpop.f32.mrb[35].mxu1 }
 0x19d   :  { %v1296_v16 = vadd.f32 %v1032_v31, %v847_v14  ;;  %v1034_v19 = vpop.f32.mrb[35].mxu0 }
 0x19f   :  { %1084 = vst.msk [vmem:[%s2091_s3 + $0x88] sm:$0xff] %vm1066_vm1, %v1296_v16  ;;  %v852_v20 = vpop.f32.mrb[36].mxu1 }
 0x1a0   :  { %v1037_v21 = vpop.f32.mrb[36].mxu0  ;;  %v854_v50 = vpop.f32.mrb[37].mxu1 }
 0x1a1   :  { %v1297_v22 = vadd.f32 %v1037_v21, %v852_v20  ;;  %v1039_v42 = vpop.f32.mrb[37].mxu0 }
 0x1a3   :  { %1085 = vst.msk [vmem:[%s2091_s3 + $0x90] sm:$0xff] %vm1066_vm1, %v1297_v22  ;;  %v857_v23 = vpop.f32.mrb[38].mxu1 }
 0x1a4   :  { %v1042_v34 = vpop.f32.mrb[38].mxu0  ;;  %v859_v24 = vpop.f32.mrb[39].mxu1 }
 0x1a5   :  { %v1298_v25 = vadd.f32 %v1042_v34, %v857_v23  ;;  %v1044_v27 = vpop.f32.mrb[39].mxu0 }
 0x1a7   :  { %1086 = vst.msk [vmem:[%s2091_s3 + $0x98] sm:$0xff] %vm1066_vm1, %v1298_v25  ;;  %v862_v28 = vpop.f32.mrb[40].mxu1 }
 0x1a8   :  { %v1047_v58 = vpop.f32.mrb[40].mxu0  ;;  %v864_v29 = vpop.f32.mrb[41].mxu1 }
 0x1a9   :  { %v1299_v32 = vadd.f32 %v1047_v58, %v862_v28  ;;  %v1049_v52 = vpop.f32.mrb[41].mxu0 }
 0x1ab   :  { %1087 = vst.msk [vmem:[%s2091_s3 + $0xa0] sm:$0xff] %vm1066_vm1, %v1299_v32  ;;  %v867_v0 = vpop.f32.mrb[42].mxu1 }
 0x1ac   :  { %v1052_v33 = vpop.f32.mrb[42].mxu0  ;;  %v869_v37 = vpop.f32.mrb[43].mxu1 }
 0x1ad   :  { %v1300_v38 = vadd.f32 %v1052_v33, %v867_v0  ;;  %v1054_v8 = vpop.f32.mrb[43].mxu0 }
 0x1af   :  { %1088 = vst.msk [vmem:[%s2091_s3 + $0xa8] sm:$0xff] %vm1066_vm1, %v1300_v38  ;;  %v872_v39 = vpop.f32.mrb[44].mxu1 }
 0x1b0   :  { %v1057_v56 = vpop.f32.mrb[44].mxu0  ;;  %v874_v62 = vpop.f32.mrb[45].mxu1 }
 0x1b1   :  { %v1301_v30 = vadd.f32 %v1057_v56, %v872_v39  ;;  %v1059_v41 = vpop.f32.mrb[45].mxu0 }
 0x1b3   :  { %1089 = vst.msk [vmem:[%s2091_s3 + $0xb0] sm:$0xff] %vm1066_vm1, %v1301_v30  ;;  %v877_v13 = vpop.f32.mrb[46].mxu1 }
 0x1b4   :  { %v1062_v43 = vpop.f32.mrb[46].mxu0  ;;  %v879_v45 = vpop.f32.mrb[47].mxu1 }
 0x1b5   :  { %v1302_v47 = vadd.f32 %v1062_v43, %v877_v13  ;;  %v1064_v48 = vpop.f32.mrb[47].mxu0 }
 0x1b7   :  { %1090 = vst.msk [vmem:[%s2091_s3 + $0xb8] sm:$0xff] %vm1066_vm1, %v1302_v47 }
 0x1b8   :  { %1095 = vsyncpa [#allocation3], 1 }

</bundles_post_ra>
